<compile_context>
chip_gen: v6e
topology: v6e:2x2x1
jax: 0.10.0
libtpu: 0.0.40
codegen_flags: <defaults>
</compile_context>

<pallas_src>
import functools
import math

import jax
import jax.numpy as jnp
from jax.experimental import pallas as pl
from jax.experimental.pallas import tpu as pltpu

# ------------------------- configuration -------------------------
D_MODEL = 32
DIM_FF = 64
NUM_HEADS = 4
SEQ = 8
BATCH = 2
LN_EPS = 1e-5


# ------------------------- Pallas kernel -------------------------
def _encoder_layer_kernel(
    x_ref,                     # (R, D)        activation rows of this block
    w_ref,                     # (3D+F pad, C) packed weights (compute dtype)
    c_ref,                     # (8, C)        packed gammas/betas/biases (f32)
    o_ref,                     # (R, D)
    *,
    num_heads: int,
    seq: int,
    d_model: int,
    d_ff: int,
    compute_dtype,
):
    D, F, H = d_model, d_ff, num_heads
    Dh = D // H
    cd = compute_dtype

    x = x_ref[...].astype(jnp.float32)               # (R, D)
    R = x.shape[0]
    bb = R // seq                                    # batches in this block
    N = H * bb                                       # attention batch = (head, batch)

    # ---- static slices of the packed parameter slabs (views -> small loads) ----
    g1, be1 = c_ref[0:1, 0:D], c_ref[1:2, 0:D]
    bqkv    = c_ref[2:3, 0:3 * D]                    # Q part already scaled by 1/sqrt(Dh)
    bo      = c_ref[3:4, 0:D]
    g2, be2 = c_ref[4:5, 0:D], c_ref[5:6, 0:D]
    b1      = c_ref[6:7, 0:F]
    b2      = c_ref[7:8, 0:D]

    wqkv = w_ref[0:D, 0:3 * D]                       # (D, 3D)  scale folded into Q cols
    wo   = w_ref[D:2 * D, 0:D]                       # (D, D)
    w1   = w_ref[2 * D:3 * D, 0:F]                   # (D, F)
    w2   = w_ref[3 * D:3 * D + F, 0:D]               # (F, D)

    def layer_norm(y, gamma, beta):
        mu = jnp.mean(y, axis=-1, keepdims=True)
        var = jnp.mean((y - mu) * (y - mu), axis=-1, keepdims=True)
        return (y - mu) * jax.lax.rsqrt(var + LN_EPS) * gamma + beta

    # ---- self-attention branch (pre-norm) ----
    y = layer_norm(x, g1, be1)                                           # (R, D) f32

    # Single full-width QKV projection: one MXU contraction (K = D).
    qkv = jnp.dot(y.astype(cd), wqkv,
                  preferred_element_type=jnp.float32) + bqkv             # (R, 3D) f32

    # Small static lane-split into head-major form: (R, H*Dh) -> (H*bb, S, Dh).
    def heads(t):
        hs = jnp.stack([t[:, h * Dh:(h + 1) * Dh] for h in range(H)], axis=0)  # (H, R, Dh)
        return hs.reshape(N, seq, Dh)                                    # n = (head, batch)

    q = heads(qkv[:, 0:D])                  # 1/sqrt(Dh) already folded into weights/bias
    k = heads(qkv[:, D:2 * D])
    v = heads(qkv[:, 2 * D:3 * D])

    # Batched scores / softmax / context over n = (head, batch).
    s = jnp.einsum("nqd,nkd->nqk", q.astype(cd), k.astype(cd),
                   preferred_element_type=jnp.float32)                   # (N, S, S)
    s = s - jnp.max(s, axis=-1, keepdims=True)
    e = jnp.exp(s)
    p = e * pl.reciprocal(jnp.sum(e, axis=-1, keepdims=True), approx=True)
    ctx = jnp.einsum("nqk,nkd->nqd", p.astype(cd), v.astype(cd),
                     preferred_element_type=jnp.float32)                 # (N, S, Dh)

    # Fused output projection: lane-concat heads back to (R, D), single K=D matmul.
    ctx = ctx.reshape(H, R, Dh)                                          # leading-dim merge
    ctx_cat = jnp.concatenate([ctx[h] for h in range(H)], axis=-1)       # (R, D)
    attn = jnp.dot(ctx_cat.astype(cd), wo,
                   preferred_element_type=jnp.float32) + bo              # (R, D)
    x1 = x + attn

    # ---- feed-forward branch (pre-norm) ----
    y2 = layer_norm(x1, g2, be2)
    h1 = jnp.maximum(jnp.dot(y2.astype(cd), w1,
                             preferred_element_type=jnp.float32) + b1, 0.0)   # ReLU
    ffn = jnp.dot(h1.astype(cd), w2,
                  preferred_element_type=jnp.float32) + b2

    # single contiguous (R, D) store
    o_ref[...] = (x1 + ffn).astype(o_ref.dtype)


# ------------------------- host-side parameter packing -------------------------
def _pack_params(params, num_heads, compute_dtype):
    """Pack the 16 parameter tensors into 2 slabs: weights (compute dtype) + vectors (f32)."""
    (g1, be1, wq, bq, wk, bk, wv, bv, wo, bo, g2, be2, w1, b1, w2, b2) = params
    D = wq.shape[0]
    F = w1.shape[1]
    Dh = D // num_heads
    scale = 1.0 / math.sqrt(Dh)

    C = max(3 * D, F, D)                              # common column width

    def pad_cols(w):
        return jnp.pad(w.astype(jnp.float32), ((0, 0), (0, C - w.shape[1])))

    # weight slab: rows [0,D)=Wqkv, [D,2D)=Wo, [2D,3D)=W1, [3D,3D+F)=W2
    wqkv = jnp.concatenate([wq * scale, wk, wv], axis=1)          # (D, 3D), scale folded
    wslab = jnp.concatenate(
        [pad_cols(wqkv), pad_cols(wo), pad_cols(w1), pad_cols(w2)], axis=0)
    pad_rows = (-wslab.shape[0]) % 8
    if pad_rows:
        wslab = jnp.pad(wslab, ((0, pad_rows), (0, 0)))
    wslab = wslab.astype(compute_dtype)

    # vector slab (f32): g1, be1, bqkv, bo, g2, be2, b1, b2  -> (8, C)
    def row(v):
        v = jnp.asarray(v, jnp.float32).reshape(-1)
        return jnp.pad(v, (0, C - v.shape[0]))

    bqkv = jnp.concatenate([bq * scale, bk, bv], axis=1)          # (1, 3D)
    cslab = jnp.stack(
        [row(g1), row(be1), row(bqkv), row(bo), row(g2), row(be2), row(b1), row(b2)],
        axis=0)
    return wslab, cslab


# ------------------------- wrapper -------------------------
def encoder_layer_pallas(x, params, *, num_heads=NUM_HEADS, batch_blocks=1,
                         compute_dtype=jnp.bfloat16):
    """batch_blocks=1 (default) runs the whole (B*S, D) slab in one grid step.
    Grid>1 is a serial loop on single-TC chips (v5e/v6e) and only worth it on
    v7x megacore with large B*S; keep 1 unless you have benchmarked otherwise."""
    B, S, D = x.shape
    assert D % num_heads == 0
    assert batch_blocks >= 1 and B % batch_blocks == 0
    bb = B // batch_blocks
    rows = bb * S
    F = params[12].shape[1]

    wslab, cslab = _pack_params(params, num_heads, compute_dtype)

    x2 = x.reshape(B * S, D)                          # fold (B, S) into one row axis

    kernel = functools.partial(_encoder_layer_kernel, num_heads=num_heads, seq=S,
                               d_model=D, d_ff=F, compute_dtype=compute_dtype)

    # VMEM guard: resident weight/vector slabs + double-buffered activation blocks.
    w_item = jnp.dtype(compute_dtype).itemsize
    vmem_bytes = int(wslab.size * w_item + cslab.size * 4
                     + 2 * 2 * rows * D * 4          # in + out blocks, double-buffered
                     + (4 << 20))                    # headroom for in-kernel temporaries
    vmem_bytes = max(8 << 20, min(vmem_bytes, 64 << 20))

    cost = pl.CostEstimate(
        flops=int(2 * B * S * (4 * D * D + 2 * S * D + 2 * D * F)),
        transcendentals=int(B * num_heads * S * S + 2 * B * S),
        bytes_accessed=int(2 * x2.size * 4 + wslab.size * w_item + cslab.size * 4),
    )

    out = pl.pallas_call(
        kernel,
        out_shape=jax.ShapeDtypeStruct((B * S, D), jnp.float32),
        grid=(batch_blocks,),
        in_specs=[
            pl.BlockSpec((rows, D), lambda i: (i, 0)),          # activation rows
            pl.BlockSpec(wslab.shape, lambda i: (0, 0)),        # weights resident
            pl.BlockSpec(cslab.shape, lambda i: (0, 0)),        # vectors resident
        ],
        out_specs=pl.BlockSpec((rows, D), lambda i: (i, 0)),
        compiler_params=pltpu.CompilerParams(
            dimension_semantics=("arbitrary",),
            vmem_limit_bytes=vmem_bytes),
        cost_estimate=cost,
    )(x2, wslab, cslab)
    return out.reshape(B, S, D)


# ------------------------- pure-JAX reference -------------------------
def encoder_layer_ref(x, params, *, num_heads=NUM_HEADS):
    (g1, be1, wq, bq, wk, bk, wv, bv, wo, bo, g2, be2, w1, b1, w2, b2) = params
    B, S, D = x.shape
    Dh = D // num_heads

    def ln(y, g, b):
        mu = jnp.mean(y, axis=-1, keepdims=True)
        var = jnp.mean((y - mu) ** 2, axis=-1, keepdims=True)
        return (y - mu) / jnp.sqrt(var + LN_EPS) * g + b

    y = ln(x, g1, be1)
    q = y @ wq + bq
    k = y @ wk + bk
    v = y @ wv + bv
    q = q.reshape(B, S, num_heads, Dh).transpose(0, 2, 1, 3) / math.sqrt(Dh)
    k = k.reshape(B, S, num_heads, Dh).transpose(0, 2, 1, 3)
    v = v.reshape(B, S, num_heads, Dh).transpose(0, 2, 1, 3)
    s = jnp.einsum("bhqd,bhkd->bhqk", q, k)
    p = jax.nn.softmax(s, axis=-1)
    attn = jnp.einsum("bhqk,bhkd->bhqd", p, v).transpose(0, 2, 1, 3).reshape(B, S, D)
    attn = attn @ wo + bo
    x1 = x + attn

    y2 = ln(x1, g2, be2)
    ffn = jnp.maximum(y2 @ w1 + b1, 0.0) @ w2 + b2
    return x1 + ffn


# ------------------------- parameter init -------------------------
def make_params(key, d_model=D_MODEL, d_ff=DIM_FF):
    ks = jax.random.split(key, 12)
    xavier = lambda k, shape: jax.random.normal(k, shape, jnp.float32) * math.sqrt(
        2.0 / (shape[0] + shape[1]))
    g1 = jnp.ones((1, d_model), jnp.float32)
    be1 = jnp.zeros((1, d_model), jnp.float32)
    wq = xavier(ks[0], (d_model, d_model)); bq = jnp.zeros((1, d_model), jnp.float32)
    wk = xavier(ks[1], (d_model, d_model)); bk = jnp.zeros((1, d_model), jnp.float32)
    wv = xavier(ks[2], (d_model, d_model)); bv = jnp.zeros((1, d_model), jnp.float32)
    wo = xavier(ks[3], (d_model, d_model))
    bo = 0.01 * jax.random.normal(ks[4], (1, d_model), jnp.float32)
    g2 = jnp.ones((1, d_model), jnp.float32)
    be2 = jnp.zeros((1, d_model), jnp.float32)
    w1 = xavier(ks[5], (d_model, d_ff))
    b1 = 0.01 * jax.random.normal(ks[6], (1, d_ff), jnp.float32)
    w2 = xavier(ks[7], (d_ff, d_model))
    b2 = 0.01 * jax.random.normal(ks[8], (1, d_model), jnp.float32)
    return (g1, be1, wq, bq, wk, bk, wv, bv, wo, bo, g2, be2, w1, b1, w2, b2)


# ------------------------- main -------------------------
if __name__ == "__main__":
    key = jax.random.PRNGKey(0)
    kx, kp = jax.random.split(key)
    x = jax.random.normal(kx, (BATCH, SEQ, D_MODEL), jnp.float32)
    params = make_params(kp)

    ref = encoder_layer_ref(x, params)

    # 1) f32 MXU operands — tight check.
    out_f32 = jax.block_until_ready(
        encoder_layer_pallas(x, params, compute_dtype=jnp.float32))
    assert out_f32.shape == (BATCH, SEQ, D_MODEL)
    assert jnp.allclose(out_f32, ref, atol=5e-3, rtol=5e-3), "f32 mismatch vs reference"

    # 2) bf16 MXU operands with f32 accumulation (default; v6e/v7x fast path,
    #    also preferred MXU format on v5e) — loose check.
    out_bf16 = jax.block_until_ready(encoder_layer_pallas(x, params))
    assert out_bf16.shape == (BATCH, SEQ, D_MODEL)
    assert jnp.allclose(out_bf16, ref, atol=1e-1, rtol=1e-1), "bf16 mismatch vs reference"

    print("KERNEL_OK")
</pallas_src>

<mosaic_0001>
module attributes {stable_mosaic.version = 11 : i64} {
  func.func @_encoder_layer_kernel(%arg0: i32, %arg1: memref<16x32xf32, #tpu.memory_space<vmem>>, %arg2: memref<160x96xf32, #tpu.memory_space<vmem>>, %arg3: memref<8x96xf32, #tpu.memory_space<vmem>>, %arg4: memref<16x32xf32, #tpu.memory_space<vmem>>) attributes {dimension_semantics = [#tpu.dimension_semantics<arbitrary>], iteration_bounds = array<i64: 1>, scalar_prefetch = 0 : i64, scratch_operands = 0 : i64, tpu.core_type = #tpu.core_type<tc>, window_params = [{transform_indices = @transform_0, window_bounds = array<i64: 16, 32>}, {pipeline_mode = #tpu.pipeline_mode<synchronous>, transform_indices = @transform_1, window_bounds = array<i64: 160, 96>}, {pipeline_mode = #tpu.pipeline_mode<synchronous>, transform_indices = @transform_2, window_bounds = array<i64: 8, 96>}, {transform_indices = @transform_3, window_bounds = array<i64: 16, 32>}]} {
    %c0 = arith.constant 0 : index
    %c0_0 = arith.constant 0 : index
    %0 = vector.load %arg1[%c0, %c0_0] : memref<16x32xf32, #tpu.memory_space<vmem>>, vector<16x32xf32>
    %c0_1 = arith.constant 0 : index
    %c0_2 = arith.constant 0 : index
    %1 = vector.load %arg3[%c0_1, %c0_2] : memref<8x96xf32, #tpu.memory_space<vmem>>, vector<1x32xf32>
    %c1 = arith.constant 1 : index
    %c0_3 = arith.constant 0 : index
    %2 = vector.load %arg3[%c1, %c0_3] : memref<8x96xf32, #tpu.memory_space<vmem>>, vector<1x32xf32>
    %c2 = arith.constant 2 : index
    %c0_4 = arith.constant 0 : index
    %3 = vector.load %arg3[%c2, %c0_4] : memref<8x96xf32, #tpu.memory_space<vmem>>, vector<1x96xf32>
    %c3 = arith.constant 3 : index
    %c0_5 = arith.constant 0 : index
    %4 = vector.load %arg3[%c3, %c0_5] : memref<8x96xf32, #tpu.memory_space<vmem>>, vector<1x32xf32>
    %c4 = arith.constant 4 : index
    %c0_6 = arith.constant 0 : index
    %5 = vector.load %arg3[%c4, %c0_6] : memref<8x96xf32, #tpu.memory_space<vmem>>, vector<1x32xf32>
    %c5 = arith.constant 5 : index
    %c0_7 = arith.constant 0 : index
    %6 = vector.load %arg3[%c5, %c0_7] : memref<8x96xf32, #tpu.memory_space<vmem>>, vector<1x32xf32>
    %c6 = arith.constant 6 : index
    %c0_8 = arith.constant 0 : index
    %7 = vector.load %arg3[%c6, %c0_8] : memref<8x96xf32, #tpu.memory_space<vmem>>, vector<1x64xf32>
    %c7 = arith.constant 7 : index
    %c0_9 = arith.constant 0 : index
    %8 = vector.load %arg3[%c7, %c0_9] : memref<8x96xf32, #tpu.memory_space<vmem>>, vector<1x32xf32>
    %c0_10 = arith.constant 0 : index
    %c0_11 = arith.constant 0 : index
    %9 = vector.load %arg2[%c0_10, %c0_11] : memref<160x96xf32, #tpu.memory_space<vmem>>, vector<32x96xf32>
    %c32 = arith.constant 32 : index
    %c0_12 = arith.constant 0 : index
    %10 = vector.load %arg2[%c32, %c0_12] : memref<160x96xf32, #tpu.memory_space<vmem>>, vector<32x32xf32>
    %c64 = arith.constant 64 : index
    %c0_13 = arith.constant 0 : index
    %11 = vector.load %arg2[%c64, %c0_13] : memref<160x96xf32, #tpu.memory_space<vmem>>, vector<32x64xf32>
    %c96 = arith.constant 96 : index
    %c0_14 = arith.constant 0 : index
    %12 = vector.load %arg2[%c96, %c0_14] : memref<160x96xf32, #tpu.memory_space<vmem>>, vector<64x32xf32>
    %cst = arith.constant dense<0.000000e+00> : vector<16xf32>
    %13 = vector.multi_reduction <add>, %0, %cst [1] : vector<16x32xf32> to vector<16xf32>
    %14 = vector.shape_cast %13 : vector<16xf32> to vector<16x1xf32>
    %cst_15 = arith.constant 3.200000e+01 : f32
    %15 = vector.broadcast %cst_15 : f32 to vector<16x1xf32>
    %16 = arith.divf %14, %15 : vector<16x1xf32>
    %17 = vector.broadcast %16 : vector<16x1xf32> to vector<16x32xf32>
    %18 = arith.subf %0, %17 : vector<16x32xf32>
    %19 = vector.broadcast %16 : vector<16x1xf32> to vector<16x32xf32>
    %20 = arith.subf %0, %19 : vector<16x32xf32>
    %21 = arith.mulf %18, %20 : vector<16x32xf32>
    %cst_16 = arith.constant dense<0.000000e+00> : vector<16xf32>
    %22 = vector.multi_reduction <add>, %21, %cst_16 [1] : vector<16x32xf32> to vector<16xf32>
    %23 = vector.shape_cast %22 : vector<16xf32> to vector<16x1xf32>
    %cst_17 = arith.constant 3.200000e+01 : f32
    %24 = vector.broadcast %cst_17 : f32 to vector<16x1xf32>
    %25 = arith.divf %23, %24 : vector<16x1xf32>
    %26 = vector.broadcast %16 : vector<16x1xf32> to vector<16x32xf32>
    %27 = arith.subf %0, %26 : vector<16x32xf32>
    %cst_18 = arith.constant 9.99999974E-6 : f32
    %28 = vector.broadcast %cst_18 : f32 to vector<16x1xf32>
    %29 = arith.addf %25, %28 : vector<16x1xf32>
    %30 = math.rsqrt %29 : vector<16x1xf32>
    %31 = vector.broadcast %30 : vector<16x1xf32> to vector<16x32xf32>
    %32 = arith.mulf %27, %31 : vector<16x32xf32>
    %33 = vector.broadcast %1 : vector<1x32xf32> to vector<16x32xf32>
    %34 = arith.mulf %32, %33 : vector<16x32xf32>
    %35 = vector.broadcast %2 : vector<1x32xf32> to vector<16x32xf32>
    %36 = arith.addf %34, %35 : vector<16x32xf32>
    %cst_19 = arith.constant dense<0.000000e+00> : vector<16x96xf32>
    %37 = tpu.matmul %36, %9, %cst_19 {dimension_numbers = #tpu.dot_dimension_numbers<[1], [0], [0], [1], [0, 0, 1, 1], [], []>} : vector<16x32xf32>, vector<32x96xf32>, vector<16x96xf32> -> vector<16x96xf32>
    %38 = vector.broadcast %3 : vector<1x96xf32> to vector<16x96xf32>
    %39 = arith.addf %37, %38 : vector<16x96xf32>
    %40 = vector.extract_strided_slice %39 {offsets = [0, 0], sizes = [16, 32], strides = [1, 1]} : vector<16x96xf32> to vector<16x32xf32>
    %41 = vector.extract_strided_slice %40 {offsets = [0, 0], sizes = [16, 8], strides = [1, 1]} : vector<16x32xf32> to vector<16x8xf32>
    %42 = vector.extract_strided_slice %40 {offsets = [0, 8], sizes = [16, 8], strides = [1, 1]} : vector<16x32xf32> to vector<16x8xf32>
    %43 = vector.extract_strided_slice %40 {offsets = [0, 16], sizes = [16, 8], strides = [1, 1]} : vector<16x32xf32> to vector<16x8xf32>
    %44 = vector.extract_strided_slice %40 {offsets = [0, 24], sizes = [16, 8], strides = [1, 1]} : vector<16x32xf32> to vector<16x8xf32>
    %45 = vector.shape_cast %41 : vector<16x8xf32> to vector<1x16x8xf32>
    %46 = vector.shape_cast %42 : vector<16x8xf32> to vector<1x16x8xf32>
    %47 = vector.shape_cast %43 : vector<16x8xf32> to vector<1x16x8xf32>
    %48 = vector.shape_cast %44 : vector<16x8xf32> to vector<1x16x8xf32>
    %49 = tpu.concatenate %45, %46, %47, %48 in 0 : vector<1x16x8xf32>, vector<1x16x8xf32>, vector<1x16x8xf32>, vector<1x16x8xf32> -> vector<4x16x8xf32>
    %50 = vector.shape_cast %49 : vector<4x16x8xf32> to vector<8x8x8xf32>
    %51 = vector.extract_strided_slice %39 {offsets = [0, 32], sizes = [16, 32], strides = [1, 1]} : vector<16x96xf32> to vector<16x32xf32>
    %52 = vector.extract_strided_slice %51 {offsets = [0, 0], sizes = [16, 8], strides = [1, 1]} : vector<16x32xf32> to vector<16x8xf32>
    %53 = vector.extract_strided_slice %51 {offsets = [0, 8], sizes = [16, 8], strides = [1, 1]} : vector<16x32xf32> to vector<16x8xf32>
    %54 = vector.extract_strided_slice %51 {offsets = [0, 16], sizes = [16, 8], strides = [1, 1]} : vector<16x32xf32> to vector<16x8xf32>
    %55 = vector.extract_strided_slice %51 {offsets = [0, 24], sizes = [16, 8], strides = [1, 1]} : vector<16x32xf32> to vector<16x8xf32>
    %56 = vector.shape_cast %52 : vector<16x8xf32> to vector<1x16x8xf32>
    %57 = vector.shape_cast %53 : vector<16x8xf32> to vector<1x16x8xf32>
    %58 = vector.shape_cast %54 : vector<16x8xf32> to vector<1x16x8xf32>
    %59 = vector.shape_cast %55 : vector<16x8xf32> to vector<1x16x8xf32>
    %60 = tpu.concatenate %56, %57, %58, %59 in 0 : vector<1x16x8xf32>, vector<1x16x8xf32>, vector<1x16x8xf32>, vector<1x16x8xf32> -> vector<4x16x8xf32>
    %61 = vector.shape_cast %60 : vector<4x16x8xf32> to vector<8x8x8xf32>
    %62 = vector.extract_strided_slice %39 {offsets = [0, 64], sizes = [16, 32], strides = [1, 1]} : vector<16x96xf32> to vector<16x32xf32>
    %63 = vector.extract_strided_slice %62 {offsets = [0, 0], sizes = [16, 8], strides = [1, 1]} : vector<16x32xf32> to vector<16x8xf32>
    %64 = vector.extract_strided_slice %62 {offsets = [0, 8], sizes = [16, 8], strides = [1, 1]} : vector<16x32xf32> to vector<16x8xf32>
    %65 = vector.extract_strided_slice %62 {offsets = [0, 16], sizes = [16, 8], strides = [1, 1]} : vector<16x32xf32> to vector<16x8xf32>
    %66 = vector.extract_strided_slice %62 {offsets = [0, 24], sizes = [16, 8], strides = [1, 1]} : vector<16x32xf32> to vector<16x8xf32>
    %67 = vector.shape_cast %63 : vector<16x8xf32> to vector<1x16x8xf32>
    %68 = vector.shape_cast %64 : vector<16x8xf32> to vector<1x16x8xf32>
    %69 = vector.shape_cast %65 : vector<16x8xf32> to vector<1x16x8xf32>
    %70 = vector.shape_cast %66 : vector<16x8xf32> to vector<1x16x8xf32>
    %71 = tpu.concatenate %67, %68, %69, %70 in 0 : vector<1x16x8xf32>, vector<1x16x8xf32>, vector<1x16x8xf32>, vector<1x16x8xf32> -> vector<4x16x8xf32>
    %72 = vector.shape_cast %71 : vector<4x16x8xf32> to vector<8x8x8xf32>
    "tpu.trace_start"() <{level = 10 : i32, message = "nqd,nkd->nqk"}> : () -> ()
    %cst_20 = arith.constant dense<0.000000e+00> : vector<8x8x8xf32>
    %73 = tpu.matmul %50, %61, %cst_20 {dimension_numbers = #tpu.dot_dimension_numbers<[2], [2], [1], [1], [0, 0, 0, 1, 1, 1], [0], [0]>} : vector<8x8x8xf32>, vector<8x8x8xf32>, vector<8x8x8xf32> -> vector<8x8x8xf32>
    "tpu.trace_stop"() : () -> ()
    %cst_21 = arith.constant dense<0xFF800000> : vector<8x8xf32>
    %74 = vector.multi_reduction <maximumf>, %73, %cst_21 [2] : vector<8x8x8xf32> to vector<8x8xf32>
    %75 = vector.shape_cast %74 : vector<8x8xf32> to vector<8x8x1xf32>
    %76 = vector.broadcast %75 : vector<8x8x1xf32> to vector<8x8x8xf32>
    %77 = arith.subf %73, %76 : vector<8x8x8xf32>
    %78 = math.exp %77 : vector<8x8x8xf32>
    %cst_22 = arith.constant dense<0.000000e+00> : vector<8x8xf32>
    %79 = vector.multi_reduction <add>, %78, %cst_22 [2] : vector<8x8x8xf32> to vector<8x8xf32>
    %80 = vector.shape_cast %79 : vector<8x8xf32> to vector<8x8x1xf32>
    %81 = tpu.reciprocal %80 {approx = true} : vector<8x8x1xf32> -> vector<8x8x1xf32>
    %82 = vector.broadcast %81 : vector<8x8x1xf32> to vector<8x8x8xf32>
    %83 = arith.mulf %78, %82 : vector<8x8x8xf32>
    "tpu.trace_start"() <{level = 10 : i32, message = "nqk,nkd->nqd"}> : () -> ()
    %cst_23 = arith.constant dense<0.000000e+00> : vector<8x8x8xf32>
    %84 = tpu.matmul %83, %72, %cst_23 {dimension_numbers = #tpu.dot_dimension_numbers<[2], [1], [1], [2], [0, 0, 0, 1, 1, 2], [0], [0]>} : vector<8x8x8xf32>, vector<8x8x8xf32>, vector<8x8x8xf32> -> vector<8x8x8xf32>
    "tpu.trace_stop"() : () -> ()
    %85 = vector.shape_cast %84 : vector<8x8x8xf32> to vector<4x16x8xf32>
    %86 = vector.extract_strided_slice %85 {offsets = [0, 0, 0], sizes = [1, 16, 8], strides = [1, 1, 1]} : vector<4x16x8xf32> to vector<1x16x8xf32>
    %87 = vector.shape_cast %86 : vector<1x16x8xf32> to vector<16x8xf32>
    %88 = vector.extract_strided_slice %85 {offsets = [1, 0, 0], sizes = [1, 16, 8], strides = [1, 1, 1]} : vector<4x16x8xf32> to vector<1x16x8xf32>
    %89 = vector.shape_cast %88 : vector<1x16x8xf32> to vector<16x8xf32>
    %90 = vector.extract_strided_slice %85 {offsets = [2, 0, 0], sizes = [1, 16, 8], strides = [1, 1, 1]} : vector<4x16x8xf32> to vector<1x16x8xf32>
    %91 = vector.shape_cast %90 : vector<1x16x8xf32> to vector<16x8xf32>
    %92 = vector.extract_strided_slice %85 {offsets = [3, 0, 0], sizes = [1, 16, 8], strides = [1, 1, 1]} : vector<4x16x8xf32> to vector<1x16x8xf32>
    %93 = vector.shape_cast %92 : vector<1x16x8xf32> to vector<16x8xf32>
    %94 = tpu.concatenate %87, %89, %91, %93 in 1 : vector<16x8xf32>, vector<16x8xf32>, vector<16x8xf32>, vector<16x8xf32> -> vector<16x32xf32>
    %cst_24 = arith.constant dense<0.000000e+00> : vector<16x32xf32>
    %95 = tpu.matmul %94, %10, %cst_24 {dimension_numbers = #tpu.dot_dimension_numbers<[1], [0], [0], [1], [0, 0, 1, 1], [], []>} : vector<16x32xf32>, vector<32x32xf32>, vector<16x32xf32> -> vector<16x32xf32>
    %96 = vector.broadcast %4 : vector<1x32xf32> to vector<16x32xf32>
    %97 = arith.addf %95, %96 : vector<16x32xf32>
    %98 = arith.addf %0, %97 : vector<16x32xf32>
    %cst_25 = arith.constant dense<0.000000e+00> : vector<16xf32>
    %99 = vector.multi_reduction <add>, %98, %cst_25 [1] : vector<16x32xf32> to vector<16xf32>
    %100 = vector.shape_cast %99 : vector<16xf32> to vector<16x1xf32>
    %cst_26 = arith.constant 3.200000e+01 : f32
    %101 = vector.broadcast %cst_26 : f32 to vector<16x1xf32>
    %102 = arith.divf %100, %101 : vector<16x1xf32>
    %103 = vector.broadcast %102 : vector<16x1xf32> to vector<16x32xf32>
    %104 = arith.subf %98, %103 : vector<16x32xf32>
    %105 = vector.broadcast %102 : vector<16x1xf32> to vector<16x32xf32>
    %106 = arith.subf %98, %105 : vector<16x32xf32>
    %107 = arith.mulf %104, %106 : vector<16x32xf32>
    %cst_27 = arith.constant dense<0.000000e+00> : vector<16xf32>
    %108 = vector.multi_reduction <add>, %107, %cst_27 [1] : vector<16x32xf32> to vector<16xf32>
    %109 = vector.shape_cast %108 : vector<16xf32> to vector<16x1xf32>
    %cst_28 = arith.constant 3.200000e+01 : f32
    %110 = vector.broadcast %cst_28 : f32 to vector<16x1xf32>
    %111 = arith.divf %109, %110 : vector<16x1xf32>
    %112 = vector.broadcast %102 : vector<16x1xf32> to vector<16x32xf32>
    %113 = arith.subf %98, %112 : vector<16x32xf32>
    %cst_29 = arith.constant 9.99999974E-6 : f32
    %114 = vector.broadcast %cst_29 : f32 to vector<16x1xf32>
    %115 = arith.addf %111, %114 : vector<16x1xf32>
    %116 = math.rsqrt %115 : vector<16x1xf32>
    %117 = vector.broadcast %116 : vector<16x1xf32> to vector<16x32xf32>
    %118 = arith.mulf %113, %117 : vector<16x32xf32>
    %119 = vector.broadcast %5 : vector<1x32xf32> to vector<16x32xf32>
    %120 = arith.mulf %118, %119 : vector<16x32xf32>
    %121 = vector.broadcast %6 : vector<1x32xf32> to vector<16x32xf32>
    %122 = arith.addf %120, %121 : vector<16x32xf32>
    %cst_30 = arith.constant dense<0.000000e+00> : vector<16x64xf32>
    %123 = tpu.matmul %122, %11, %cst_30 {dimension_numbers = #tpu.dot_dimension_numbers<[1], [0], [0], [1], [0, 0, 1, 1], [], []>} : vector<16x32xf32>, vector<32x64xf32>, vector<16x64xf32> -> vector<16x64xf32>
    %124 = vector.broadcast %7 : vector<1x64xf32> to vector<16x64xf32>
    %125 = arith.addf %123, %124 : vector<16x64xf32>
    %cst_31 = arith.constant 0.000000e+00 : f32
    %126 = vector.broadcast %cst_31 : f32 to vector<16x64xf32>
    %127 = arith.maximumf %125, %126 : vector<16x64xf32>
    %cst_32 = arith.constant dense<0.000000e+00> : vector<16x32xf32>
    %128 = tpu.matmul %127, %12, %cst_32 {dimension_numbers = #tpu.dot_dimension_numbers<[1], [0], [0], [1], [0, 0, 1, 1], [], []>} : vector<16x64xf32>, vector<64x32xf32>, vector<16x32xf32> -> vector<16x32xf32>
    %129 = vector.broadcast %8 : vector<1x32xf32> to vector<16x32xf32>
    %130 = arith.addf %128, %129 : vector<16x32xf32>
    %131 = arith.addf %98, %130 : vector<16x32xf32>
    %c0_33 = arith.constant 0 : index
    %c0_34 = arith.constant 0 : index
    %132 = vector.load %arg4[%c0_33, %c0_34] : memref<16x32xf32, #tpu.memory_space<vmem>>, vector<16x32xf32>
    tpu.vector_store %arg4[%c0_33, %c0_34], %131 {strides = array<i32>} : memref<16x32xf32, #tpu.memory_space<vmem>>, vector<16x32xf32>,
    return
  }
  func.func @transform_0(%arg0: i32) -> (i32, i32) {
    %c0_i32 = arith.constant 0 : i32
    %c0_i32_0 = arith.constant 0 : i32
    return %arg0, %c0_i32 : i32, i32
  }
  func.func @transform_1(%arg0: i32) -> (i32, i32) {
    %c0_i32 = arith.constant 0 : i32
    %c0_i32_0 = arith.constant 0 : i32
    %c0_i32_1 = arith.constant 0 : i32
    return %c0_i32, %c0_i32_0 : i32, i32
  }
  func.func @transform_2(%arg0: i32) -> (i32, i32) {
    %c0_i32 = arith.constant 0 : i32
    %c0_i32_0 = arith.constant 0 : i32
    %c0_i32_1 = arith.constant 0 : i32
    return %c0_i32, %c0_i32_0 : i32, i32
  }
  func.func @transform_3(%arg0: i32) -> (i32, i32) {
    %c0_i32 = arith.constant 0 : i32
    %c0_i32_0 = arith.constant 0 : i32
    return %arg0, %c0_i32 : i32, i32
  }
}

</mosaic_0001>

<bundles_post_ra>
// kernel: tpu_custom_call.1
= control target key start
LH: loop header
LB: loop body
LE: loop exit
PB: predicated region body
PF: predicated region fallthrough
CT: control target
= control target key end

     0   :  { %8 = vsyncpa [#allocation3], 0  ;;  %s2507_s0 = inlined_call_operand.hbm [shape: f32[16,32], index: 0, kind: input, shape index: {}]   ;;  %s2508_s1 = inlined_call_operand.hbm [shape: f32[160,96], index: 1, kind: input, shape index: {}]   ;;  %s2509_s2 = inlined_call_operand.hbm [shape: f32[8,96], index: 2, kind: input, shape index: {}]   ;;  %s2510_s3 = inlined_call_operand.hbm [shape: f32[16,32], index: 3, kind: output, shape index: {}]  }
   0x1   :  { %9 = vsyncpa [#allocation6], 0 }
   0x2   :  { %10 = vsyncpa [#allocation4], 0  ;;  %s2253_s12 = smov [#allocation5]   ;;  %s2254_s14 = smov [#allocation2]  }
   0x3   :  { %s28_s13 = sshll.u32 %s2253_s12, 4  ;;  %s16_s15 = sshll.u32 %s2254_s14, 4  ;;  %s29_s13 = int_to_ptr.vmem [resolvable:$true] %s28_s13  ;;  %s17_s15 = int_to_ptr.vmem [resolvable:$true] %s16_s15 }
   0x4   :  { %s2175_s16 = scalar_lea.vmem %s29_s13, 2560  ;;  %p2180_p1 = scmp.lt.s32.totalorder %s29_s13, %s29_s13 }
   0x5   :  { %p2176_p0 = scmp.ne.s32.totalorder %s29_s13, %s2175_s16  ;;  %p2181_p2 = scmp.lt.s32.totalorder %s2175_s16, %s2175_s16 }
   0x7   :  { %p2182_p3 = por %p2181_p2, %p2180_p1 }
   0x9   :  { %p2183_p4 = pnand %p2182_p3, %p2176_p0 }
   0xb   :  { %2186 = shalt.err (!%p2183_p4)
}
   0xc   :  { %s2255_s17 = smov 128   ;;  %s2256_s18 = smov 8  }
   0xd   :  { %34 = dma.hbm_to_vmem [thread:$0]  %s2508_s1, 2560, %s29_s13, [#allocation6], %s2255_s17, %s2255_s17, %s2256_s18  }
   0xe   :  { %s2195_s21 = scalar_lea.vmem %s17_s15, 256  ;;  %p2200_p6 = scmp.lt.s32.totalorder %s17_s15, %s17_s15 }
   0xf   :  { %p2196_p5 = scmp.ne.s32.totalorder %s17_s15, %s2195_s21  ;;  %p2201_p7 = scmp.lt.s32.totalorder %s2195_s21, %s2195_s21 }
  0x11   :  { %p2202_p8 = por %p2201_p7, %p2200_p6 }
  0x13   :  { %p2203_p9 = pnand %p2202_p8, %p2196_p5 }
  0x15   :  { %2206 = shalt.err (!%p2203_p9)
}
  0x16   :  { %22 = dma.hbm_to_vmem [thread:$0]  %s2507_s0, 256, %s17_s15, [#allocation3], %s2255_s17, %s2255_s17, %s2256_s18  }
  0x17   :  { %s2257_s24 = smov [#allocation7]  }
  0x18   :  { %s41_s25 = sshll.u32 %s2257_s24, 4  ;;  %s42_s25 = int_to_ptr.vmem [resolvable:$true] %s41_s25 }
  0x19   :  { %s2215_s26 = scalar_lea.vmem %s42_s25, 128  ;;  %p2220_p11 = scmp.lt.s32.totalorder %s42_s25, %s42_s25 }
  0x1a   :  { %p2216_p10 = scmp.ne.s32.totalorder %s42_s25, %s2215_s26  ;;  %p2221_p12 = scmp.lt.s32.totalorder %s2215_s26, %s2215_s26 }
  0x1c   :  { %p2222_p13 = por %p2221_p12, %p2220_p11 }
  0x1e   :  { %p2223_p0 = pnand %p2222_p13, %p2216_p10 }
  0x20   :  { %2226 = shalt.err (!%p2223_p0)
}
  0x21   :  { %44 = dma.hbm_to_vmem [thread:$0]  %s2509_s2, 128, %s42_s25, [#allocation6]  }
  0x22   :  { %2247 = dma.done.wait [#allocation3], 256  }
  0x23   :  { %2248 = vsyncadd [#allocation3], 4294967040 }
  0x24   :  { %2249 = dma.done.wait [#allocation6], 2688  }
  0x25   :  { %2250 = vsyncadd [#allocation6], 4294964608  ;;  %vm84_vm0 = vcmask 261120   ;;  %v2303_v0 = vld [vmem:[#allocation2] sm:$0xff]  ;;  %v2305_v1 = vld [vmem:[#allocation2 + $0x8] sm:$0xff]  ;;  %v2258_v35 = vmov 0.0  }
  0x26   :  { %v85_v2 = vsel %vm84_vm0, %v2303_v0, 0.0  ;;  %v88_v3 = vsel %vm84_vm0, %v2305_v1, 0.0  ;;  %v67_v14 = vld [vmem:[#allocation5 + $0x18] sm:$0xff]  ;;  %v66_v15 = vld [vmem:[#allocation5 + $0x10] sm:$0xff]  ;;  %v65_v16 = vld [vmem:[#allocation5 + $0x8] sm:$0xff]  ;;  %2001 = vmatprep.subr.mxu0 %v2258_v35  ;;  %vm2259_vm1 = vmmov 0  }
  0x27   :  { %86 = vadd.xlane.f32.xlu0 %v85_v2  ;;  %1980 = vmatprep.subr.mxu1 %v67_v14  ;;  %v64_v17 = vld [vmem:[#allocation5] sm:$0xff]  ;;  %s2260_s0 = smov 120   ;;  %s2261_s2 = smov 112   ;;  %vm225_vm2 = vcmask 64512   ;;  %vm1554_vm3 = vcmask 130048   ;;  %vm1557_vm4 = vcmask 195584  }
  0x28   :  { %1981 = vmatpush3.msra.mxu1 %v67_v14  ;;  %v1880_v25 = vld [vmem:[#allocation7] ss:$0 sm:$0xff]  ;;  %v1881_v27 = vld [vmem:[#allocation7 + $0x1] ss:$0 sm:$0xff]  ;;  %v1882_v34 = vld [vmem:[#allocation7 + $0x2] ss:$0 sm:$0xff]  ;;  %2003 = vmatprep.mubr.msk.f32.mxu0 %vm2259_vm1, %v2258_v35 }
  0x29   :  { %1982 = vmatprep.subr.mxu1 %v66_v15  ;;  %s2262_s28 = smov 104   ;;  %s2263_s29 = smov 96   ;;  %vm1776_vm5 = vcmask 523264  }
  0x2a   :  { %1983 = vmatpush3.msra.mxu1 %v66_v15  ;;  %s2264_s30 = smov 64   ;;  %s2265_s4 = smov 16  }
  0x2b   :  { %89 = vadd.xlane.f32.xlu0 %v88_v3  ;;  %1984 = vmatprep.subr.mxu1 %v65_v16  ;;  %s2266_s5 = smov 24   ;;  %s2267_s6 = smov [#allocation8]  }
  0x2c   :  { %1985 = vmatpush3.msra.mxu1 %v65_v16  ;;  %s1867_s7 = sshll.u32 %s2267_s6, 4  ;;  %s1868_s7 = int_to_ptr.vmem [resolvable:$true] %s1867_s7 }
  0x2d   :  { %1986 = vmatprep.subr.mxu1 %v64_v17  ;;  %s2227_s8 = scalar_lea.vmem %s1868_s7, 256  ;;  %p2232_p2 = scmp.lt.s32.totalorder %s1868_s7, %s1868_s7 }
  0x2e   :  { %1987 = vmatpush3.msra.mxu1 %v64_v17  ;;  %p2228_p1 = scmp.ne.s32.totalorder %s1868_s7, %s2227_s8  ;;  %p2233_p3 = scmp.lt.s32.totalorder %s2227_s8, %s2227_s8 }
  0x2f   :  { %1991 = vmatprep.subr.mxu1 %v2258_v35 }
  0x30   :  { %p2234_p4 = por %p2233_p3, %p2232_p2 }
  0x32   :  { %p2235_p5 = pnand %p2234_p4, %p2228_p1 }
  0xb0   :  { %v87_v4 = vpop.xlane.xlu0 %86 }
  0xb1   :  { %v92_v5 = vmul.f32 0.03125, %v87_v4 }
  0xb3   :  { %v94_v6 = vsub.f32 %v2303_v0, %v92_v5 }
  0xb4   :  { %v90_v7 = vpop.xlane.xlu0 %89 }
  0xb5   :  { %v93_v8 = vmul.f32 0.03125, %v90_v7  ;;  %v96_v9 = vmul.f32 %v94_v6, %v94_v6 }
  0xb7   :  { %v95_v10 = vsub.f32 %v2305_v1, %v93_v8  ;;  %v98_v11 = vsel %vm84_vm0, %v96_v9, 0.0 }
  0xb8   :  { %99 = vadd.xlane.f32.xlu1 %v98_v11 }
  0xb9   :  { %v97_v12 = vmul.f32 %v95_v10, %v95_v10 }
  0xbb   :  { %v101_v13 = vsel %vm84_vm0, %v97_v12, 0.0 }
  0xbc   :  { %102 = vadd.xlane.f32.xlu1 %v101_v13 }
 0x141   :  { %v100_v18 = vpop.xlane.xlu1 %99 }
 0x142   :  { %v104_v19 = vmul.f32 0.03125, %v100_v18 }
 0x144   :  { %v106_v20 = vadd.f32 1e-05, %v104_v19 }
 0x145   :  { %v103_v21 = vpop.xlane.xlu1 %102 }
 0x146   :  { %2127 = vrsqrt.f32 %v106_v20  ;;  %v105_v22 = vmul.f32 0.03125, %v103_v21 }
 0x148   :  { %v107_v23 = vadd.f32 1e-05, %v105_v22 }
 0x14a   :  { %2129 = vrsqrt.f32 %v107_v23 }
 0x153   :  { %v2128_v24 = vpop.eup %2127 }
 0x154   :  { %v110_v26 = vmul.f32 %v2128_v24, %v94_v6 }
 0x156   :  { %v116_v28 = vmul.f32 %v1880_v25, %v110_v26 }
 0x157   :  { %v2130_v29 = vpop.eup %2129 }
 0x158   :  { %v111_v30 = vmul.f32 %v2130_v29, %v95_v10  ;;  %v122_v31 = vadd.f32 %v1881_v27, %v116_v28 }
 0x15a   :  { %v117_v32 = vmul.f32 %v1880_v25, %v111_v30  ;;  %1988 = vmatprep.mubr.msk.f32.mxu1 %vm84_vm0, %v122_v31 }
 0x15c   :  { %v123_v33 = vadd.f32 %v1881_v27, %v117_v32 }
 0x15e   :  { %1989 = vmatmul.mubr.msk.f32.vlgmr.msra.gmra.mxu1 %vm84_vm0, %v123_v33 }
 0x15f   :  { %1993 = vmatprep.mubr.msk.f32.mxu1 %vm2259_vm1, %v2258_v35 }
 0x21e   :  { %v1990_v36 = vpop.f32.mrf.mxu1 }
 0x21f   :  { %v2319_v37 = vadd.f32 %v1990_v36, %v1882_v34 }
 0x220   :  { %v200_v38 = vpop.f32.mrf.mxu1 }
 0x221   :  { %v2325_v39 = vadd.f32 %v1882_v34, %v200_v38  ;;  %213 = vrot.lane.b32.xlu1 %v2319_v37, %s2260_s0 }
 0x223   :  { %211 = vrot.lane.b32.xlu0 %v2325_v39, %s2260_s0 }
 0x225   :  { %215 = vrot.lane.b32.xlu1 %v2325_v39, %s2261_s2 }
 0x227   :  { %219 = vrot.lane.b32.xlu0 %v2325_v39, %s2262_s28 }
 0x229   :  { %217 = vrot.lane.b32.xlu1 %v2319_v37, %s2261_s2 }
 0x22b   :  { %223 = vrot.lane.b32.xlu0 %v2325_v39, %s2263_s29 }
 0x22d   :  { %221 = vrot.lane.b32.xlu1 %v2319_v37, %s2262_s28 }
 0x231   :  { %300 = vrot.lane.b32.xlu1 %v2319_v37, %s2263_s29 }
 0x293   :  { %v2335_v40 = vpop.permute.xlu1 %213 }
 0x294   :  { %452 = vrot.lane.b32.xlu1 %v2335_v40, %s2263_s29 }
 0x295   :  { %v2338_v41 = vpop.permute.xlu0 %211 }
 0x296   :  { %376 = vrot.lane.b32.xlu0 %v2338_v41, %s2263_s29 }
 0x297   :  { %v2341_v42 = vpop.permute.xlu1 %215 }
 0x299   :  { %v2343_v43 = vpop.permute.xlu0 %219 }
 0x29a   :  { %528 = vrot.lane.b32.xlu0 %v2341_v42, %s2263_s29 }
 0x29b   :  { %v2346_v44 = vpop.permute.xlu1 %217 }
 0x29c   :  { %604 = vrot.lane.b32.xlu1 %v2346_v44, %s2263_s29 }
 0x29d   :  { %v224_v45 = vpop.permute.xlu0 %223 }
 0x29e   :  { %680 = vrot.lane.b32.xlu0 %v2343_v43, %s2263_s29  ;;  %1992 = vmatpush3.xpose.msk.msra.mxu1 %vm225_vm2, %v224_v45 }
 0x29f   :  { %v2351_v46 = vpop.permute.xlu1 %221  ;;  %1996 = vmatprep.subr.mxu1 %v2258_v35 }
 0x2a0   :  { %756 = vrot.lane.b32.xlu1 %v2351_v46, %s2263_s29 }
 0x2a1   :  { %1994 = vmatmul.mubr.msk.f32.vlgmr.msra.gmra.mxu1 %vm225_vm2, %v2325_v39 }
 0x2a2   :  { %1998 = vmatprep.mubr.msk.f32.mxu1 %vm2259_vm1, %v2258_v35 }
 0x2a3   :  { %v301_v47 = vpop.permute.xlu1 %300 }
 0x2a4   :  { %1997 = vmatpush3.xpose.msk.msra.mxu1 %vm225_vm2, %v301_v47 }
 0x2a5   :  { %2006 = vmatprep.subr.mxu1 %v2258_v35 }
 0x2a7   :  { %1999 = vmatmul.mubr.msk.f32.vlgmr.msra.gmra.mxu1 %vm225_vm2, %v2319_v37 }
 0x2a8   :  { %2008 = vmatprep.mubr.msk.f32.mxu1 %vm2259_vm1, %v2258_v35 }
 0x306   :  { %v453_v48 = vpop.permute.xlu1 %452 }
 0x307   :  { %2007 = vmatpush3.xpose.msk.msra.mxu1 %vm225_vm2, %v453_v48 }
 0x308   :  { %v377_v49 = vpop.permute.xlu0 %376  ;;  %2016 = vmatprep.subr.mxu1 %v2258_v35 }
 0x309   :  { %2002 = vmatpush3.xpose.msk.msra.mxu0 %vm225_vm2, %v377_v49 }
 0x30a   :  { %2009 = vmatmul.mubr.msk.f32.vlgmr.msra.gmra.mxu1 %vm225_vm2, %v2335_v40  ;;  %2011 = vmatprep.subr.mxu0 %v2258_v35 }
 0x30b   :  { %2018 = vmatprep.mubr.msk.f32.mxu1 %vm2259_vm1, %v2258_v35 }
 0x30c   :  { %2004 = vmatmul.mubr.msk.f32.vlgmr.msra.gmra.mxu0 %vm225_vm2, %v2338_v41  ;;  %v529_v50 = vpop.permute.xlu0 %528 }
 0x30d   :  { %2012 = vmatpush3.xpose.msk.msra.mxu0 %vm225_vm2, %v529_v50  ;;  %2013 = vmatprep.mubr.msk.f32.mxu0 %vm2259_vm1, %v2258_v35 }
 0x30e   :  { %v605_v51 = vpop.permute.xlu1 %604  ;;  %2021 = vmatprep.subr.mxu0 %v2258_v35 }
 0x30f   :  { %2017 = vmatpush3.xpose.msk.msra.mxu1 %vm225_vm2, %v605_v51 }
 0x310   :  { %2014 = vmatmul.mubr.msk.f32.vlgmr.msra.gmra.mxu0 %vm225_vm2, %v2341_v42  ;;  %v681_v52 = vpop.permute.xlu0 %680  ;;  %2026 = vmatprep.subr.mxu1 %v2258_v35 }
 0x311   :  { %2022 = vmatpush3.xpose.msk.msra.mxu0 %vm225_vm2, %v681_v52  ;;  %2023 = vmatprep.mubr.msk.f32.mxu0 %vm2259_vm1, %v2258_v35 }
 0x312   :  { %v757_v53 = vpop.permute.xlu1 %756  ;;  %2019 = vmatmul.mubr.msk.f32.vlgmr.msra.gmra.mxu1 %vm225_vm2, %v2346_v44  ;;  %2031 = vmatprep.subr.mxu0 %v2258_v35 }
 0x313   :  { %2027 = vmatpush3.xpose.msk.msra.mxu1 %vm225_vm2, %v757_v53  ;;  %2028 = vmatprep.mubr.msk.f32.mxu1 %vm2259_vm1, %v2258_v35 }
 0x314   :  { %2024 = vmatmul.mubr.msk.f32.vlgmr.msra.gmra.mxu0 %vm225_vm2, %v2343_v43  ;;  %2036 = vmatprep.subr.mxu1 %v2258_v35 }
 0x315   :  { %2033 = vmatprep.mubr.msk.f32.mxu0 %vm2259_vm1, %v2258_v35 }
 0x316   :  { %2029 = vmatmul.mubr.msk.f32.vlgmr.msra.gmra.mxu1 %vm225_vm2, %v2351_v46 }
 0x317   :  { %2038 = vmatprep.mubr.msk.f32.mxu1 %vm2259_vm1, %v2258_v35 }
 0x361   :  { %v296_v54 = vpop.f32.mrf.mxu1 }
 0x362   :  { %v832_v55 = vsel %vm225_vm2, %v296_v54, -inf }
 0x363   :  { %833 = vmax.xlane.f32.xlu0 %v832_v55  ;;  %v1995_v56 = vpop.f32.mrf.mxu1 }
 0x367   :  { %v372_v57 = vpop.f32.mrf.mxu1 }
 0x368   :  { %v835_v58 = vsel %vm225_vm2, %v372_v57, -inf }
 0x369   :  { %836 = vmax.xlane.f32.xlu1 %v835_v58  ;;  %v2000_v59 = vpop.f32.mrf.mxu1 }
 0x3ca   :  { %v524_v60 = vpop.f32.mrf.mxu1 }
 0x3cb   :  { %v841_v61 = vsel %vm225_vm2, %v524_v60, -inf }
 0x3cc   :  { %842 = vmax.xlane.f32.xlu0 %v841_v61  ;;  %v448_v62 = vpop.f32.mrf.mxu0  ;;  %v2010_v63 = vpop.f32.mrf.mxu1 }
 0x3cd   :  { %v838_v3 = vsel %vm225_vm2, %v448_v62, -inf }
 0x3ce   :  { %v2005_v2 = vpop.f32.mrf.mxu0 }
 0x3d0   :  { %839 = vmax.xlane.f32.xlu0 %v838_v3  ;;  %v600_v4 = vpop.f32.mrf.mxu0 }
 0x3d1   :  { %v844_v8 = vsel %vm225_vm2, %v600_v4, -inf }
 0x3d2   :  { %v2015_v5 = vpop.f32.mrf.mxu0  ;;  %v676_v6 = vpop.f32.mrf.mxu1 }
 0x3d3   :  { %v847_v7 = vsel %vm225_vm2, %v676_v6, -inf }
 0x3d4   :  { %848 = vmax.xlane.f32.xlu1 %v847_v7  ;;  %v2020_v9 = vpop.f32.mrf.mxu1  ;;  %845 = vmax.xlane.f32.xlu0 %v844_v8  ;;  %v752_v10 = vpop.f32.mrf.mxu0 }
 0x3d5   :  { %v850_v14 = vsel %vm225_vm2, %v752_v10, -inf }
 0x3d6   :  { %v2025_v11 = vpop.f32.mrf.mxu0  ;;  %v828_v12 = vpop.f32.mrf.mxu1 }
 0x3d7   :  { %v853_v13 = vsel %vm225_vm2, %v828_v12, -inf }
 0x3d8   :  { %854 = vmax.xlane.f32.xlu1 %v853_v13  ;;  %v2030_v15 = vpop.f32.mrf.mxu1  ;;  %851 = vmax.xlane.f32.xlu0 %v850_v14 }
 0x3e9   :  { %996 = vrot.lane.b32.xlu1 %v2319_v37, %s2264_s30 }
 0x3ec   :  { %v834_v16 = vpop.xlane.xlu0 %833 }
 0x3ed   :  { %1072 = vrot.lane.b32.xlu1 %v2338_v41, %s2264_s30  ;;  %v856_v17 = vsub.f32 %v296_v54, %v834_v16 }
 0x3ee   :  { %920 = vrot.lane.b32.xlu0 %v2325_v39, %s2264_s30 }
 0x3ef   :  { %v864_v18 = vmul.f32 1.442695, %v856_v17 }
 0x3f1   :  { %1148 = vrot.lane.b32.xlu1 %v2335_v40, %s2264_s30  ;;  %2131 = vpow2.f32 %v864_v18 }
 0x3f2   :  { %1224 = vrot.lane.b32.xlu0 %v2341_v42, %s2264_s30  ;;  %v837_v19 = vpop.xlane.xlu1 %836 }
 0x3f3   :  { %v857_v20 = vsub.f32 %v372_v57, %v837_v19 }
 0x3f5   :  { %1300 = vrot.lane.b32.xlu1 %v2346_v44, %s2264_s30  ;;  %v866_v21 = vmul.f32 1.442695, %v857_v20 }
 0x3f7   :  { %2133 = vpow2.f32 %v866_v21 }
 0x3fe   :  { %v2421_v22 = vpop.eup %2131 }
 0x3ff   :  { %v880_v23 = vsel %vm225_vm2, %v2421_v22, 0.0 }
 0x404   :  { %v2425_v24 = vpop.eup %2133 }
 0x405   :  { %v883_v25 = vsel %vm225_vm2, %v2425_v24, 0.0 }
 0x411   :  { %881 = vadd.xlane.f32.xlu0 %v880_v23 }
 0x419   :  { %884 = vadd.xlane.f32.xlu1 %v883_v25 }
 0x455   :  { %v843_v26 = vpop.xlane.xlu0 %842 }
 0x456   :  { %v859_v27 = vsub.f32 %v524_v60, %v843_v26 }
 0x458   :  { %v870_v28 = vmul.f32 1.442695, %v859_v27 }
 0x459   :  { %v840_v29 = vpop.xlane.xlu0 %839 }
 0x45a   :  { %2135 = vpow2.f32 %v870_v28  ;;  %v858_v30 = vsub.f32 %v448_v62, %v840_v29 }
 0x45c   :  { %v868_v31 = vmul.f32 1.442695, %v858_v30 }
 0x45d   :  { %v849_v32 = vpop.xlane.xlu1 %848  ;;  %v846_v33 = vpop.xlane.xlu0 %845 }
 0x45e   :  { %2137 = vpow2.f32 %v868_v31  ;;  %v861_v34 = vsub.f32 %v676_v6, %v849_v32  ;;  %v860_v36 = vsub.f32 %v600_v4, %v846_v33  ;;  %v71_v31 = vld [vmem:[#allocation5 + $0x38] sm:$0xff]  ;;  %v70_v32 = vld [vmem:[#allocation5 + $0x30] sm:$0xff]  ;;  %v69_v33 = vld [vmem:[#allocation5 + $0x28] sm:$0xff] }
 0x460   :  { %v874_v37 = vmul.f32 1.442695, %v861_v34  ;;  %v872_v38 = vmul.f32 1.442695, %v860_v36 }
 0x461   :  { %v855_v39 = vpop.xlane.xlu1 %854  ;;  %v852_v40 = vpop.xlane.xlu0 %851 }
 0x462   :  { %2139 = vpow2.f32 %v874_v37  ;;  %v863_v41 = vsub.f32 %v828_v12, %v855_v39  ;;  %v862_v42 = vsub.f32 %v752_v10, %v852_v40 }
 0x463   :  { %2141 = vpow2.f32 %v872_v38 }
 0x464   :  { %v878_v44 = vmul.f32 1.442695, %v863_v41  ;;  %v876_v45 = vmul.f32 1.442695, %v862_v42 }
 0x465   :  { %v997_v47 = vpop.permute.xlu1 %996  ;;  %v921_v48 = vpop.permute.xlu0 %920 }
 0x466   :  { %2143 = vpow2.f32 %v878_v44  ;;  %2032 = vmatpush3.msra.mxu0 %v921_v48  ;;  %2037 = vmatpush3.msra.mxu1 %v997_v47 }
 0x467   :  { %v2136_v49 = vpop.eup %2135  ;;  %2145 = vpow2.f32 %v876_v45  ;;  %2041 = vmatprep.subr.mxu0 %v2258_v35  ;;  %2046 = vmatprep.subr.mxu1 %v2258_v35 }
 0x468   :  { %v889_v50 = vsel %vm225_vm2, %v2136_v49, 0.0 }
 0x469   :  { %890 = vadd.xlane.f32.xlu1 %v889_v50  ;;  %v1073_v61 = vpop.permute.xlu1 %1072  ;;  %v1225_v62 = vpop.permute.xlu0 %1224 }
 0x46b   :  { %v2138_v51 = vpop.eup %2137 }
 0x46c   :  { %v886_v52 = vsel %vm225_vm2, %v2138_v51, 0.0 }
 0x46d   :  { %887 = vadd.xlane.f32.xlu0 %v886_v52  ;;  %v1149_v63 = vpop.permute.xlu1 %1148 }
 0x46f   :  { %v2140_v53 = vpop.eup %2139 }
 0x470   :  { %v2142_v54 = vpop.eup %2141  ;;  %v895_v55 = vsel %vm225_vm2, %v2140_v53, 0.0 }
 0x471   :  { %896 = vadd.xlane.f32.xlu1 %v895_v55  ;;  %v892_v56 = vsel %vm225_vm2, %v2142_v54, 0.0  ;;  %v1301_v3 = vpop.permute.xlu1 %1300 }
 0x472   :  { %893 = vadd.xlane.f32.xlu0 %v892_v56 }
 0x473   :  { %v2435_v57 = vpop.eup %2143 }
 0x474   :  { %v2437_v58 = vpop.eup %2145  ;;  %v901_v59 = vsel %vm225_vm2, %v2435_v57, 0.0 }
 0x475   :  { %902 = vadd.xlane.f32.xlu1 %v901_v59  ;;  %v898_v60 = vsel %vm225_vm2, %v2437_v58, 0.0 }
 0x476   :  { %899 = vadd.xlane.f32.xlu0 %v898_v60 }
 0x486   :  { %1452 = vrot.lane.b32.xlu1 %v2351_v46, %s2264_s30 }
 0x48c   :  { %1376 = vrot.lane.b32.xlu0 %v2343_v43, %s2264_s30 }
 0x49a   :  { %v882_v2 = vpop.xlane.xlu0 %881 }
 0x49b   :  { %2147 = vrcp.f32 %v882_v2 }
 0x4a2   :  { %v885_v4 = vpop.xlane.xlu1 %884 }
 0x4a3   :  { %2149 = vrcp.f32 %v885_v4 }
 0x4a8   :  { %v2148_v5 = vpop.eup %2147 }
 0x4a9   :  { %v912_v6 = vmul.f32 %v2148_v5, %v2421_v22 }
 0x4ab   :  { %2034 = vmatmul.mubr.msk.f32.vlgmr.msra.gmra.mxu0 %vm225_vm2, %v912_v6 }
 0x4ac   :  { %2042 = vmatpush3.msra.mxu0 %v1073_v61  ;;  %2043 = vmatprep.mubr.msk.f32.mxu0 %vm2259_vm1, %v2258_v35  ;;  %v1909_v61 = vld [vmem:[#allocation7 + $0x3] ss:$0 sm:$0xff] }
 0x4ad   :  { %2051 = vmatprep.subr.mxu0 %v2258_v35 }
 0x4b0   :  { %v2150_v43 = vpop.eup %2149 }
 0x4b1   :  { %v913_v46 = vmul.f32 %v2150_v43, %v2425_v24 }
 0x4b3   :  { %2039 = vmatmul.mubr.msk.f32.vlgmr.msra.gmra.mxu1 %vm225_vm2, %v913_v46 }
 0x4b4   :  { %2047 = vmatpush3.msra.mxu1 %v1149_v63  ;;  %2048 = vmatprep.mubr.msk.f32.mxu1 %vm2259_vm1, %v2258_v35 }
 0x4b5   :  { %2056 = vmatprep.subr.mxu1 %v2258_v35 }
 0x4f2   :  { %v891_v7 = vpop.xlane.xlu1 %890 }
 0x4f3   :  { %2151 = vrcp.f32 %v891_v7 }
 0x4f6   :  { %v888_v8 = vpop.xlane.xlu0 %887 }
 0x4f7   :  { %2153 = vrcp.f32 %v888_v8 }
 0x4fa   :  { %v897_v9 = vpop.xlane.xlu1 %896 }
 0x4fb   :  { %2155 = vrcp.f32 %v897_v9  ;;  %v894_v10 = vpop.xlane.xlu0 %893 }
 0x4fc   :  { %2157 = vrcp.f32 %v894_v10 }
 0x4fe   :  { %v903_v11 = vpop.xlane.xlu1 %902 }
 0x4ff   :  { %2159 = vrcp.f32 %v903_v11  ;;  %v900_v12 = vpop.xlane.xlu0 %899 }
 0x500   :  { %v2152_v13 = vpop.eup %2151  ;;  %2161 = vrcp.f32 %v900_v12 }
 0x501   :  { %v915_v14 = vmul.f32 %v2152_v13, %v2136_v49 }
 0x502   :  { %v1453_v21 = vpop.permute.xlu1 %1452 }
 0x503   :  { %2049 = vmatmul.mubr.msk.f32.vlgmr.msra.gmra.mxu1 %vm225_vm2, %v915_v14  ;;  %v1377_v23 = vpop.permute.xlu0 %1376  ;;  %v75_v14 = vld [vmem:[#allocation5 + $0x58] sm:$0xff] }
 0x504   :  { %v2154_v15 = vpop.eup %2153  ;;  %2057 = vmatpush3.msra.mxu1 %v1301_v3  ;;  %2058 = vmatprep.mubr.msk.f32.mxu1 %vm2259_vm1, %v2258_v35 }
 0x505   :  { %v914_v16 = vmul.f32 %v2154_v15, %v2138_v51  ;;  %2066 = vmatprep.subr.mxu1 %v2258_v35  ;;  %v74_v15 = vld [vmem:[#allocation5 + $0x50] sm:$0xff] }
 0x507   :  { %2044 = vmatmul.mubr.msk.f32.vlgmr.msra.gmra.mxu0 %vm225_vm2, %v914_v16  ;;  %v73_v16 = vld [vmem:[#allocation5 + $0x48] sm:$0xff] }
 0x508   :  { %v2156_v17 = vpop.eup %2155  ;;  %2052 = vmatpush3.msra.mxu0 %v1225_v62  ;;  %2053 = vmatprep.mubr.msk.f32.mxu0 %vm2259_vm1, %v2258_v35 }
 0x509   :  { %v2158_v18 = vpop.eup %2157  ;;  %2061 = vmatprep.subr.mxu0 %v2258_v35  ;;  %v917_v19 = vmul.f32 %v2156_v17, %v2140_v53  ;;  %v72_v17 = vld [vmem:[#allocation5 + $0x40] sm:$0xff] }
 0x50a   :  { %v916_v20 = vmul.f32 %v2158_v18, %v2142_v54  ;;  %v83_v18 = vld [vmem:[#allocation5 + $0x98] sm:$0xff] }
 0x50b   :  { %2059 = vmatmul.mubr.msk.f32.vlgmr.msra.gmra.mxu1 %vm225_vm2, %v917_v19  ;;  %v82_v19 = vld [vmem:[#allocation5 + $0x90] sm:$0xff] }
 0x50c   :  { %v2160_v22 = vpop.eup %2159  ;;  %2054 = vmatmul.mubr.msk.f32.vlgmr.msra.gmra.mxu0 %vm225_vm2, %v916_v20  ;;  %2067 = vmatpush3.msra.mxu1 %v1453_v21  ;;  %v81_v20 = vld [vmem:[#allocation5 + $0x88] sm:$0xff]  ;;  %v80_v21 = vld [vmem:[#allocation5 + $0x80] sm:$0xff] }
 0x50d   :  { %v2162_v24 = vpop.eup %2161  ;;  %2062 = vmatpush3.msra.mxu0 %v1377_v23  ;;  %2063 = vmatprep.mubr.msk.f32.mxu0 %vm2259_vm1, %v2258_v35  ;;  %v919_v25 = vmul.f32 %v2160_v22, %v2435_v57 }
 0x50e   :  { %2068 = vmatprep.mubr.msk.f32.mxu1 %vm2259_vm1, %v2258_v35  ;;  %v918_v26 = vmul.f32 %v2162_v24, %v2437_v58  ;;  %2071 = vmatprep.subr.mxu0 %v71_v31  ;;  %v68_v35 = vld [vmem:[#allocation5 + $0x20] sm:$0xff] }
 0x50f   :  { %2069 = vmatmul.mubr.msk.f32.vlgmr.msra.gmra.mxu1 %vm225_vm2, %v919_v25  ;;  %2082 = vmatprep.subr.mxu1 %v75_v14 }
 0x510   :  { %2064 = vmatmul.mubr.msk.f32.vlgmr.msra.gmra.mxu0 %vm225_vm2, %v918_v26  ;;  %2083 = vmatpush3.msra.mxu1 %v75_v14 }
 0x511   :  { %2072 = vmatpush3.msra.mxu0 %v71_v31  ;;  %2084 = vmatprep.subr.mxu1 %v74_v15  ;;  %v1913_v31 = vld [vmem:[#allocation7 + $0x5] ss:$0 sm:$0xff] }
 0x512   :  { %2073 = vmatprep.subr.mxu0 %v70_v32  ;;  %2085 = vmatpush3.msra.mxu1 %v74_v15 }
 0x513   :  { %2074 = vmatpush3.msra.mxu0 %v70_v32  ;;  %2086 = vmatprep.subr.mxu1 %v73_v16 }
 0x514   :  { %2075 = vmatprep.subr.mxu0 %v69_v33  ;;  %2087 = vmatpush3.msra.mxu1 %v73_v16 }
 0x515   :  { %2076 = vmatpush3.msra.mxu0 %v69_v33  ;;  %2088 = vmatprep.subr.mxu1 %v72_v17 }
 0x516   :  { %2077 = vmatprep.subr.mxu0 %v68_v35  ;;  %2089 = vmatpush3.msra.mxu1 %v72_v17 }
 0x517   :  { %2078 = vmatpush3.msra.mxu0 %v68_v35 }
 0x518   :  { %2093 = vmatprep.subr.mxu0 %v83_v18 }
 0x56b   :  { %v992_v27 = vpop.f32.mrf.mxu0 }
 0x56d   :  { %v2035_v28 = vpop.f32.mrf.mxu0 }
 0x573   :  { %v1068_v29 = vpop.f32.mrf.mxu1 }
 0x575   :  { %v2040_v30 = vpop.f32.mrf.mxu1 }
 0x5c3   :  { %v1220_v34 = vpop.f32.mrf.mxu1 }
 0x5c4   :  { %1532 = vrot.lane.b32.xlu1 %v1220_v34, %s2256_s18 }
 0x5c5   :  { %v2050_v36 = vpop.f32.mrf.mxu1 }
 0x5c7   :  { %v1144_v37 = vpop.f32.mrf.mxu0 }
 0x5c8   :  { %1530 = vrot.lane.b32.xlu0 %v1144_v37, %s2256_s18 }
 0x5c9   :  { %v2045_v38 = vpop.f32.mrf.mxu0 }
 0x5ca   :  { %v79_v38 = vld [vmem:[#allocation5 + $0x78] sm:$0xff] }
 0x5cb   :  { %v1372_v39 = vpop.f32.mrf.mxu1 }
 0x5cc   :  { %v1296_v40 = vpop.f32.mrf.mxu0  ;;  %1540 = vrot.lane.b32.xlu1 %v1372_v39, %s2265_s4  ;;  %v78_v39 = vld [vmem:[#allocation5 + $0x70] sm:$0xff] }
 0x5cd   :  { %1538 = vrot.lane.b32.xlu0 %v1296_v40, %s2265_s4  ;;  %v2060_v41 = vpop.f32.mrf.mxu1  ;;  %v77_v40 = vld [vmem:[#allocation5 + $0x68] sm:$0xff] }
 0x5ce   :  { %v2055_v42 = vpop.f32.mrf.mxu0  ;;  %v76_v41 = vld [vmem:[#allocation5 + $0x60] sm:$0xff] }
 0x5cf   :  { %v1524_v44 = vpop.f32.mrf.mxu1  ;;  %v1914_v42 = vld [vmem:[#allocation7 + $0x6] ss:$0 sm:$0xff] }
 0x5d0   :  { %v1448_v45 = vpop.f32.mrf.mxu0  ;;  %1548 = vrot.lane.b32.xlu1 %v1524_v44, %s2266_s5 }
 0x5d1   :  { %1546 = vrot.lane.b32.xlu0 %v1448_v45, %s2266_s5  ;;  %v2070_v47 = vpop.f32.mrf.mxu1 }
 0x5d2   :  { %v2065_v48 = vpop.f32.mrf.mxu0 }
 0x636   :  { %v1533_v49 = vpop.permute.xlu1 %1532 }
 0x637   :  { %v1553_v53 = vsel %vm225_vm2, %v1068_v29, %v1533_v49  ;;  %v1912_v29 = vld [vmem:[#allocation7 + $0x4] ss:$0 sm:$0xff] }
 0x63a   :  { %v1531_v50 = vpop.permute.xlu0 %1530 }
 0x63b   :  { %v1552_v54 = vsel %vm225_vm2, %v992_v27, %v1531_v50 }
 0x63e   :  { %v1541_v51 = vpop.permute.xlu1 %1540 }
 0x63f   :  { %v1539_v52 = vpop.permute.xlu0 %1538  ;;  %v1556_v55 = vsel %vm1554_vm3, %v1553_v53, %v1541_v51  ;;  %v1917_v51 = vld [vmem:[#allocation7 + $0x7] ss:$0 sm:$0xff] }
 0x640   :  { %v1555_v57 = vsel %vm1554_vm3, %v1552_v54, %v1539_v52 }
 0x642   :  { %v1549_v56 = vpop.permute.xlu1 %1548 }
 0x643   :  { %v1559_v58 = vsel %vm1557_vm4, %v1556_v55, %v1549_v56  ;;  %v1547_v59 = vpop.permute.xlu0 %1546 }
 0x644   :  { %v1558_v60 = vsel %vm1557_vm4, %v1555_v57, %v1547_v59 }
 0x645   :  { %2079 = vmatprep.mubr.msk.f32.mxu0 %vm84_vm0, %v1558_v60 }
 0x646   :  { %2080 = vmatmul.mubr.msk.f32.vlgmr.msra.gmra.mxu0 %vm84_vm0, %v1559_v58 }
 0x647   :  { %2094 = vmatpush3.msra.mxu0 %v83_v18 }
 0x648   :  { %2095 = vmatprep.subr.mxu0 %v82_v19 }
 0x649   :  { %2096 = vmatpush3.msra.mxu0 %v82_v19 }
 0x64a   :  { %2097 = vmatprep.subr.mxu0 %v81_v20 }
 0x64b   :  { %2098 = vmatpush3.msra.mxu0 %v81_v20 }
 0x64c   :  { %2099 = vmatprep.subr.mxu0 %v80_v21 }
 0x64d   :  { %2100 = vmatpush3.msra.mxu0 %v80_v21 }
 0x64e   :  { %2101 = vmatprep.subr.mxu0 %v79_v38 }
 0x64f   :  { %2102 = vmatpush3.msra.mxu0 %v79_v38 }
 0x650   :  { %2103 = vmatprep.subr.mxu0 %v78_v39 }
 0x651   :  { %2104 = vmatpush3.msra.mxu0 %v78_v39 }
 0x652   :  { %2105 = vmatprep.subr.mxu0 %v77_v40 }
 0x653   :  { %2106 = vmatpush3.msra.mxu0 %v77_v40 }
 0x654   :  { %2107 = vmatprep.subr.mxu0 %v76_v41 }
 0x655   :  { %2108 = vmatpush3.msra.mxu0 %v76_v41 }
 0x706   :  { %v2081_v62 = vpop.f32.mrf.mxu0 }
 0x707   :  { %v1642_v63 = vadd.f32 %v2081_v62, %v1909_v61 }
 0x708   :  { %v1636_v2 = vpop.f32.mrf.mxu0 }
 0x709   :  { %v2482_v3 = vadd.f32 %v1642_v63, %v2305_v1  ;;  %v1637_v4 = vadd.f32 %v1909_v61, %v1636_v2 }
 0x70b   :  { %v2485_v5 = vadd.f32 %v1637_v4, %v2303_v0  ;;  %v1650_v6 = vsel %vm84_vm0, %v2482_v3, 0.0 }
 0x70c   :  { %1651 = vadd.xlane.f32.xlu1 %v1650_v6 }
 0x70d   :  { %v1647_v43 = vsel %vm84_vm0, %v2485_v5, 0.0 }
 0x70e   :  { %1648 = vadd.xlane.f32.xlu0 %v1647_v43 }
 0x795   :  { %v1652_v46 = vpop.xlane.xlu1 %1651 }
 0x796   :  { %v1654_v7 = vmul.f32 0.03125, %v1652_v46 }
 0x797   :  { %v1649_v8 = vpop.xlane.xlu0 %1648 }
 0x798   :  { %v1653_v9 = vmul.f32 0.03125, %v1649_v8  ;;  %v1656_v10 = vsub.f32 %v2482_v3, %v1654_v7 }
 0x79a   :  { %v1655_v1 = vsub.f32 %v2485_v5, %v1653_v9  ;;  %v1658_v12 = vmul.f32 %v1656_v10, %v1656_v10 }
 0x79c   :  { %v1657_v11 = vmul.f32 %v1655_v1, %v1655_v1  ;;  %v1662_v13 = vsel %vm84_vm0, %v1658_v12, 0.0 }
 0x79e   :  { %v1659_v0 = vsel %vm84_vm0, %v1657_v11, 0.0 }
 0x79f   :  { %1660 = vadd.xlane.f32.xlu0 %v1659_v0 }
 0x7a3   :  { %1663 = vadd.xlane.f32.xlu0 %v1662_v13 }
 0x828   :  { %v1661_v22 = vpop.xlane.xlu0 %1660 }
 0x829   :  { %v1665_v23 = vmul.f32 0.03125, %v1661_v22 }
 0x82b   :  { %v1667_v24 = vadd.f32 1e-05, %v1665_v23 }
 0x82c   :  { %v1664_v25 = vpop.xlane.xlu0 %1663 }
 0x82d   :  { %2163 = vrsqrt.f32 %v1667_v24  ;;  %v1666_v26 = vmul.f32 0.03125, %v1664_v25 }
 0x82f   :  { %v1668_v27 = vadd.f32 1e-05, %v1666_v26 }
 0x831   :  { %2165 = vrsqrt.f32 %v1668_v27 }
 0x83a   :  { %v2164_v28 = vpop.eup %2163 }
 0x83b   :  { %v1671_v30 = vmul.f32 %v2164_v28, %v1655_v1 }
 0x83d   :  { %v1677_v32 = vmul.f32 %v1912_v29, %v1671_v30 }
 0x83e   :  { %v2166_v33 = vpop.eup %2165 }
 0x83f   :  { %v1672_v34 = vmul.f32 %v2166_v33, %v1656_v10  ;;  %v1683_v35 = vadd.f32 %v1913_v31, %v1677_v32 }
 0x841   :  { %v1678_v36 = vmul.f32 %v1912_v29, %v1672_v34  ;;  %2090 = vmatprep.mubr.msk.f32.mxu1 %vm84_vm0, %v1683_v35 }
 0x843   :  { %v1684_v37 = vadd.f32 %v1913_v31, %v1678_v36 }
 0x845   :  { %2091 = vmatmul.mubr.msk.f32.vlgmr.msra.gmra.mxu1 %vm84_vm0, %v1684_v37 }
 0x905   :  { %v2092_v44 = vpop.f32.mrf.mxu1 }
 0x906   :  { %v1767_v45 = vadd.f32 %v2092_v44, %v1914_v42 }
 0x907   :  { %v1761_v47 = vpop.f32.mrf.mxu1 }
 0x908   :  { %v1762_v48 = vadd.f32 %v1914_v42, %v1761_v47  ;;  %v1771_v50 = vmax.f32 %v1767_v45, 0.0 }
 0x90a   :  { %v1770_v49 = vmax.f32 %v1762_v48, 0.0 }
 0x90c   :  { %2109 = vmatprep.mubr.msk.f32.mxu0 %vm1776_vm5, %v1770_v49 }
 0x90d   :  { %2110 = vmatmul.mubr.msk.f32.vlgmr.msra.gmra.mxu0 %vm1776_vm5, %v1771_v50 }
 0x9cd   :  { %v2111_v52 = vpop.f32.mrf.mxu0 }
 0x9ce   :  { %v1855_v53 = vadd.f32 %v2111_v52, %v1917_v51 }
 0x9cf   :  { %v1849_v54 = vpop.f32.mrf.mxu0 }
 0x9d0   :  { %v1859_v55 = vadd.f32 %v1855_v53, %v2482_v3  ;;  %v1850_v56 = vadd.f32 %v1917_v51, %v1849_v54 }
 0x9d2   :  { %1861 = vst.msk [vmem:[#allocation8 + $0x8] sm:$0xff] %vm84_vm0, %v1859_v55  ;;  %v1858_v57 = vadd.f32 %v1850_v56, %v2485_v5 }
 0x9d4   :  { %1860 = vst.msk [vmem:[#allocation8] sm:$0xff] %vm84_vm0, %v1858_v57 }
 0x9d5   :  { %2238 = shalt.err (!%p2235_p5)
}
 0x9d6   :  { %1873 = dma.vmem_to_hbm [thread:$0]  %s1868_s7, 256, %s2510_s3, [#allocation4], %s2255_s17, %s2255_s17, %s2256_s18  }
 0x9d7   :  { %2251 = dma.done.wait [#allocation4], 256  }
 0x9d8   :  { %2252 = vsyncadd [#allocation4], 4294967040 }
 0x9d9   :  { %1877 = vsyncpa [#allocation3], 1 }
 0x9da   :  { %1878 = vsyncpa [#allocation6], 1 }
 0x9db   :  { %1879 = vsyncpa [#allocation4], 1 }

</bundles_post_ra>
